<compile_context>
chip_gen: v7x
topology: tpu7x:2x2x1
jax: 0.10.0
libtpu: 0.0.40
codegen_flags: <defaults>
</compile_context>

<pallas_src>
import jax
import jax.numpy as jnp
from jax import lax
from jax.experimental import pallas as pl
from jax.experimental.pallas import tpu as pltpu


def _round_up(x, m):
    return ((x + m - 1) // m) * m


# ---------------------------------------------------------------------------
# Pallas kernel: one fused matmul + ReLU + slab-sum per row tile.
# ---------------------------------------------------------------------------
def cell_kernel(w_ref, p_ref, o_ref):
    # w_ref: (3*Cout, K_pad)  scale-folded, zero-embedded weights (resident block)
    # p_ref: (K_pad, tile_m)  transposed 5x5 im2col patch tile
    # o_ref: (Cout, tile_m)   lane-dense output tile
    y = jnp.maximum(
        jnp.dot(w_ref[...], p_ref[...], preferred_element_type=jnp.float32), 0.0)
    cout = o_ref.shape[0]
    o_ref[...] = (y[0:cout, :]
                  + y[cout:2 * cout, :]
                  + y[2 * cout:3 * cout, :]).astype(o_ref.dtype)


# ---------------------------------------------------------------------------
# Glue: transposed im2col (same padding, stride 1), weight embedding/scaling.
# ---------------------------------------------------------------------------
def _im2col_T(x_nhwc, k):
    """x_nhwc: (N, H, W, C) -> (k*k*C, N*H*W); rows ordered [dy, dx, cin]."""
    N, H, W, C = x_nhwc.shape
    pad = (k - 1) // 2
    xp = jnp.pad(x_nhwc, ((0, 0), (pad, pad), (pad, pad), (0, 0)))
    taps = []
    for dy in range(k):
        for dx in range(k):
            taps.append(xp[:, dy:dy + H, dx:dx + W, :])
    patches = jnp.stack(taps, axis=0)                  # (k*k, N, H, W, C)
    patches = jnp.transpose(patches, (0, 4, 1, 2, 3))  # (k*k, C, N, H, W)
    return patches.reshape(k * k * C, N * H * W)


def _embed_weight_T(w_oihw, big_k=5):
    """PyTorch (Cout, Cin, kh, kw) -> (Cout, big_k*big_k*Cin), centered zero-embed,
    column order [dy, dx, cin] matching _im2col_T(x, big_k)."""
    Cout, Cin, kh, kw = w_oihw.shape
    ph = (big_k - kh) // 2
    pw = (big_k - kw) // 2
    wt = jnp.transpose(w_oihw, (0, 2, 3, 1))            # (Cout, kh, kw, Cin)
    wt = jnp.pad(wt, ((0, 0), (ph, big_k - kh - ph), (pw, big_k - kw - pw), (0, 0)))
    return wt.reshape(Cout, big_k * big_k * Cin)


def make_channel_masks(out_channels, channel_scale_factor):
    n_masks = out_channels // channel_scale_factor
    rows = []
    for i in range(n_masks):
        n_ones = channel_scale_factor * (i + 1)
        rows.append([1.0] * n_ones + [0.0] * (out_channels - n_ones))
    return jnp.array(rows, dtype=jnp.float32)            # (n_masks, Cout)


def cell_forward(x_nchw, weights, alphas_normal, alphas_channels, channel_masks,
                 tile_m=512):
    """Pallas-backed forward of Cell.  x_nchw: (N, Cin, H, W) float32."""
    N, Cin, H, W = x_nchw.shape
    w1, w3, w5 = weights                                  # PyTorch OIHW conv weights
    Cout = w1.shape[0]
    P = N * H * W
    K5 = 25 * Cin

    # ---- host/XLA-side prep (tiny, one-time per call) ----
    x_nhwc = jnp.transpose(x_nchw, (0, 2, 3, 1))
    pT = _im2col_T(x_nhwc, 5)                             # (K5, P)

    # masks[c] = sum_j alphas_channels[j] * channel_masks[j, c]   (>= 0)
    mask_vec = jnp.sum(alphas_channels[:, None] * channel_masks, axis=0)   # (Cout,)
    # per-conv, per-channel scale = alphas_normal[0, i] * mask_vec[c]      (>= 0)
    scales = alphas_normal[0][:, None] * mask_vec[None, :]                 # (3, Cout)

    # Embed 1x1/3x3 into the 5x5 tap layout, concat along output dim, fold scales.
    # NOTE: folding scales into the weights relies on scales >= 0 (softmax alphas
    # times {0,1} masks); if negative scales were possible, apply them post-ReLU.
    wT = jnp.concatenate(
        [_embed_weight_T(w, 5) for w in (w1, w3, w5)], axis=0)             # (3*Cout, K5)
    wT = wT * scales.reshape(3 * Cout, 1)
    wT = wT.astype(jnp.float32)

    # Pad K to a multiple of 128 (aligned, lane-dense weight rows / one MXU pass)
    # and P to a multiple of tile_m (no ragged tail).
    K_pad = _round_up(K5, 128)
    P_pad = _round_up(P, tile_m)
    pT = jnp.pad(pT, ((0, K_pad - K5), (0, P_pad - P))).astype(jnp.float32)
    wT = jnp.pad(wT, ((0, 0), (0, K_pad - K5)))

    grid = (P_pad // tile_m,)

    out_t = pl.pallas_call(
        cell_kernel,
        out_shape=jax.ShapeDtypeStruct((Cout, P_pad), jnp.float32),
        grid_spec=pltpu.PrefetchScalarGridSpec(
            num_scalar_prefetch=0,
            grid=grid,
            in_specs=[
                # weights: constant block index -> stays resident across the grid
                pl.BlockSpec((3 * Cout, K_pad), lambda i: (0, 0)),
                # patches: tile along the flattened-position (lane) axis
                pl.BlockSpec((K_pad, tile_m), lambda i: (0, i)),
            ],
            out_specs=pl.BlockSpec((Cout, tile_m), lambda i: (0, i)),
        ),
        compiler_params=pltpu.CompilerParams(
            dimension_semantics=("parallel",)),
    )(wT, pT)

    # (Cout, P_pad) -> (Cout, N, H, W) -> NCHW, matching the PyTorch output layout.
    out = out_t[:, :P].reshape(Cout, N, H, W).transpose(1, 0, 2, 3)
    return out


# ---------------------------------------------------------------------------
# Pure-JAX reference (mirrors the PyTorch forward) for a sanity check.
# ---------------------------------------------------------------------------
def cell_reference(x_nchw, weights, alphas_normal, alphas_channels, channel_masks):
    mask_vec = jnp.sum(alphas_channels[:, None] * channel_masks, axis=0)
    masks = mask_vec.reshape(1, -1, 1, 1)
    acc = 0.0
    for i, (w, k) in enumerate(zip(weights, (1, 3, 5))):
        pad = (k - 1) // 2
        y = lax.conv_general_dilated(
            x_nchw, w, window_strides=(1, 1),
            padding=((pad, pad), (pad, pad)),
            dimension_numbers=("NCHW", "OIHW", "NCHW"))
        y = jnp.maximum(y, 0.0)
        acc = acc + alphas_normal[0, i] * (masks * y)
    return acc


if __name__ == "__main__":
    # Small shapes consistent with the module.
    N, Cin, H, W = 2, 4, 16, 16
    Cout = 8
    channel_scale_factor = 2
    n_masks = Cout // channel_scale_factor

    key = jax.random.PRNGKey(0)
    kx, k1, k3, k5, kan, kac = jax.random.split(key, 6)

    x = jax.random.normal(kx, (N, Cin, H, W), dtype=jnp.float32)
    # Deterministic conv weights (PyTorch OIHW shapes, bias=False).
    w1 = jax.random.normal(k1, (Cout, Cin, 1, 1), dtype=jnp.float32) * 0.1
    w3 = jax.random.normal(k3, (Cout, Cin, 3, 3), dtype=jnp.float32) * 0.1
    w5 = jax.random.normal(k5, (Cout, Cin, 5, 5), dtype=jnp.float32) * 0.1
    weights = (w1, w3, w5)

    alphas_normal = jax.nn.softmax(
        jax.random.normal(kan, (1, 3), dtype=jnp.float32), axis=-1)
    alphas_channels = jax.nn.softmax(
        jax.random.normal(kac, (n_masks,), dtype=jnp.float32), axis=-1)
    channel_masks = make_channel_masks(Cout, channel_scale_factor)

    out = cell_forward(x, weights, alphas_normal, alphas_channels, channel_masks)
    out = jax.block_until_ready(out)

    ref = cell_reference(x, weights, alphas_normal, alphas_channels, channel_masks)
    ref = jax.block_until_ready(ref)

    assert out.shape == (N, Cout, H, W)
    assert jnp.allclose(out, ref, rtol=1e-4, atol=1e-4), (
        float(jnp.max(jnp.abs(out - ref))))

    print("KERNEL_OK")
</pallas_src>

<mosaic_0001>
module attributes {stable_mosaic.version = 11 : i64} {
  func.func @cell_kernel(%arg0: i32, %arg1: memref<24x128xf32, #tpu.memory_space<vmem>>, %arg2: memref<128x512xf32, #tpu.memory_space<vmem>>, %arg3: memref<8x512xf32, #tpu.memory_space<vmem>>) attributes {dimension_semantics = [#tpu.dimension_semantics<parallel>], iteration_bounds = array<i64: 1>, scalar_prefetch = 0 : i64, scratch_operands = 0 : i64, tpu.core_type = #tpu.core_type<tc>, window_params = [{pipeline_mode = #tpu.pipeline_mode<synchronous>, transform_indices = @transform_0, window_bounds = array<i64: 24, 128>}, {transform_indices = @transform_1, window_bounds = array<i64: 128, 512>}, {transform_indices = @transform_2, window_bounds = array<i64: 8, 512>}]} {
    %c0 = arith.constant 0 : index
    %c0_0 = arith.constant 0 : index
    %0 = vector.load %arg1[%c0, %c0_0] : memref<24x128xf32, #tpu.memory_space<vmem>>, vector<24x128xf32>
    %c0_1 = arith.constant 0 : index
    %c0_2 = arith.constant 0 : index
    %1 = vector.load %arg2[%c0_1, %c0_2] : memref<128x512xf32, #tpu.memory_space<vmem>>, vector<128x512xf32>
    %cst = arith.constant dense<0.000000e+00> : vector<24x512xf32>
    %2 = tpu.matmul %0, %1, %cst {dimension_numbers = #tpu.dot_dimension_numbers<[1], [0], [0], [1], [0, 0, 1, 1], [], []>} : vector<24x128xf32>, vector<128x512xf32>, vector<24x512xf32> -> vector<24x512xf32>
    %cst_3 = arith.constant 0.000000e+00 : f32
    %3 = vector.broadcast %cst_3 : f32 to vector<24x512xf32>
    %4 = arith.maximumf %2, %3 : vector<24x512xf32>
    %5 = vector.extract_strided_slice %4 {offsets = [0, 0], sizes = [8, 512], strides = [1, 1]} : vector<24x512xf32> to vector<8x512xf32>
    %6 = vector.extract_strided_slice %4 {offsets = [8, 0], sizes = [8, 512], strides = [1, 1]} : vector<24x512xf32> to vector<8x512xf32>
    %7 = arith.addf %5, %6 : vector<8x512xf32>
    %8 = vector.extract_strided_slice %4 {offsets = [16, 0], sizes = [8, 512], strides = [1, 1]} : vector<24x512xf32> to vector<8x512xf32>
    %9 = arith.addf %7, %8 : vector<8x512xf32>
    %c0_4 = arith.constant 0 : index
    %c0_5 = arith.constant 0 : index
    %10 = vector.load %arg3[%c0_4, %c0_5] : memref<8x512xf32, #tpu.memory_space<vmem>>, vector<8x512xf32>
    tpu.vector_store %arg3[%c0_4, %c0_5], %9 {strides = array<i32>} : memref<8x512xf32, #tpu.memory_space<vmem>>, vector<8x512xf32>,
    return
  }
  func.func @transform_0(%arg0: i32) -> (i32, i32) {
    %c0_i32 = arith.constant 0 : i32
    %c0_i32_0 = arith.constant 0 : i32
    %c0_i32_1 = arith.constant 0 : i32
    return %c0_i32, %c0_i32_0 : i32, i32
  }
  func.func @transform_1(%arg0: i32) -> (i32, i32) {
    %c0_i32 = arith.constant 0 : i32
    %c0_i32_0 = arith.constant 0 : i32
    return %c0_i32, %arg0 : i32, i32
  }
  func.func @transform_2(%arg0: i32) -> (i32, i32) {
    %c0_i32 = arith.constant 0 : i32
    %c0_i32_0 = arith.constant 0 : i32
    return %c0_i32, %arg0 : i32, i32
  }
}

</mosaic_0001>

<bundles_post_ra>
// kernel: tpu_custom_call.1
= control target key start
LH: loop header
LB: loop body
LE: loop exit
PB: predicated region body
PF: predicated region fallthrough
CT: control target
= control target key end

     0   :  { %7 = vsyncpa [#allocation3], 0  ;;  %s522_s0 = inlined_call_operand.hbm [shape: f32[24,128], index: 0, kind: input, shape index: {}]   ;;  %s523_s1 = inlined_call_operand.hbm [shape: f32[128,512], index: 1, kind: input, shape index: {}]   ;;  %s524_s2 = inlined_call_operand.hbm [shape: f32[8,512], index: 2, kind: output, shape index: {}]  }
   0x1   :  { %8 = vsyncpa [#allocation6], 0 }
   0x2   :  { %9 = vsyncpa [#allocation4], 0  ;;  %s457_s9 = smov [#allocation2]   ;;  %s385_s13 = scalar_lea.hbm %s522_s0, 384 }
   0x3   :  { %s15_s10 = sshll.u32 %s457_s9, 4  ;;  %p386_p0 = scmp.ne.s32.totalorder %s522_s0, %s385_s13  ;;  %s16_s10 = int_to_ptr.vmem [resolvable:$true] %s15_s10 }
   0x4   :  { %p389_p1 = scmp.lt.u32.totalorder %s385_s13, %s522_s0 }
   0x6   :  { %p391_p2 = pnand %p389_p1, %p386_p0 }
   0x8   :  { %394 = shalt.err (!%p391_p2)
}
   0x9   :  { %s395_s18 = scalar_lea.vmem %s16_s10, 384  ;;  %p400_p4 = scmp.lt.s32.totalorder %s16_s10, %s16_s10 }
   0xa   :  { %p396_p3 = scmp.ne.s32.totalorder %s16_s10, %s395_s18  ;;  %p401_p5 = scmp.lt.s32.totalorder %s395_s18, %s395_s18 }
   0xc   :  { %p402_p6 = por %p401_p5, %p400_p4 }
   0xe   :  { %p403_p7 = pnand %p402_p6, %p396_p3 }
  0x10   :  { %406 = shalt.err (!%p403_p7)
}
  0x11   :  { %s458_s19 = smov 128   ;;  %s459_s20 = smov 8  }
  0x12   :  { %21 = dma.hbm_to_vmem [thread:$0]  %s522_s0, 384, %s16_s10, [#allocation3], %s458_s19, %s458_s19, %s459_s20  }
  0x13   :  { %s460_s23 = smov [#allocation5]   ;;  %s407_s27 = scalar_lea.hbm %s523_s1, 8192 }
  0x14   :  { %s27_s24 = sshll.u32 %s460_s23, 4  ;;  %p408_p8 = scmp.ne.s32.totalorder %s523_s1, %s407_s27  ;;  %s28_s24 = int_to_ptr.vmem [resolvable:$true] %s27_s24 }
  0x15   :  { %p411_p9 = scmp.lt.u32.totalorder %s407_s27, %s523_s1 }
  0x17   :  { %p413_p10 = pnand %p411_p9, %p408_p8 }
  0x19   :  { %416 = shalt.err (!%p413_p10)
}
  0x1a   :  { %s417_s4 = scalar_lea.vmem %s28_s24, 8192  ;;  %p422_p12 = scmp.lt.s32.totalorder %s28_s24, %s28_s24 }
  0x1b   :  { %p418_p11 = scmp.ne.s32.totalorder %s28_s24, %s417_s4  ;;  %p423_p13 = scmp.lt.s32.totalorder %s417_s4, %s417_s4 }
  0x1d   :  { %p424_p0 = por %p423_p13, %p422_p12 }
  0x1f   :  { %p425_p1 = pnand %p424_p0, %p418_p11 }
  0x21   :  { %428 = shalt.err (!%p425_p1)
}
  0x22   :  { %s461_s0 = smov 512   ;;  %s462_s5 = smov 32  }
  0x23   :  { %33 = dma.hbm_to_vmem [thread:$0]  %s523_s1, 8192, %s28_s24, [#allocation6], %s461_s0, %s461_s0, %s462_s5  }
  0x24   :  { %451 = dma.done.wait [#allocation3], 384  }
  0x25   :  { %452 = vsyncadd [#allocation3], 4294966912 }
  0x26   :  { %453 = dma.done.wait [#allocation6], 8192  }
  0x27   :  { %454 = vsyncadd [#allocation6], 4294959104  ;;  %v463_v0 = vmov 0.0   ;;  %v44_v1 = vld [vmem:[#allocation5 + $0x8] sm:$0xff]  ;;  %v46_v3 = vld [vmem:[#allocation5 + $0x18] sm:$0xff]  ;;  %s464_s1 = smov [#allocation7]  }
  0x28   :  { %171 = vmatprep.mubr.f32.mxu0 %v463_v0  ;;  %254 = vmatprep.mubr.f32.mxu1 %v463_v0  ;;  %v48_v2 = vld [vmem:[#allocation5 + $0x28] sm:$0xff]  ;;  %v50_v5 = vld [vmem:[#allocation5 + $0x38] sm:$0xff]  ;;  %v43_v6 = vld [vmem:[#allocation5] sm:$0xff]  ;;  %s303_s8 = sshll.u32 %s464_s1, 4  ;;  %s304_s8 = int_to_ptr.vmem [resolvable:$true] %s303_s8 }
  0x29   :  { %v313_v4 = vpack.c.bf16 %v48_v2, %v44_v1  ;;  %v47_v7 = vld [vmem:[#allocation5 + $0x20] sm:$0xff]  ;;  %v345_v8 = vpack.c.bf16 %v50_v5, %v46_v3  ;;  %v45_v10 = vld [vmem:[#allocation5 + $0x10] sm:$0xff]  ;;  %v52_v12 = vld [vmem:[#allocation5 + $0x48] sm:$0xff]  ;;  %s429_s9 = scalar_lea.vmem %s304_s8, 512  ;;  %p434_p3 = scmp.lt.s32.totalorder %s304_s8, %s304_s8 }
  0x2a   :  { %v315_v9 = vpack.c.bf16 %v47_v7, %v43_v6  ;;  %v49_v11 = vld [vmem:[#allocation5 + $0x30] sm:$0xff]  ;;  %v56_v14 = vld [vmem:[#allocation5 + $0x68] sm:$0xff]  ;;  %v54_v15 = vld [vmem:[#allocation5 + $0x58] sm:$0xff]  ;;  %p430_p2 = scmp.ne.s32.totalorder %s304_s8, %s429_s9  ;;  %p435_p4 = scmp.lt.s32.totalorder %s429_s9, %s429_s9 }
  0x2b   :  { %314 = vmatprep.subr.bf16.mxu0 %v313_v4  ;;  %v347_v13 = vpack.c.bf16 %v49_v11, %v45_v10  ;;  %v58_v16 = vld [vmem:[#allocation5 + $0x78] sm:$0xff]  ;;  %346 = vmatprep.subr.bf16.mxu1 %v345_v8  ;;  %v317_v17 = vpack.c.bf16 %v56_v14, %v52_v12  ;;  %v51_v19 = vld [vmem:[#allocation5 + $0x40] sm:$0xff]  ;;  %v53_v21 = vld [vmem:[#allocation5 + $0x50] sm:$0xff] }
  0x2c   :  { %316 = vmatpush1.bf16.msra.mxu0 %v315_v9  ;;  %v349_v18 = vpack.c.bf16 %v58_v16, %v54_v15  ;;  %v55_v20 = vld [vmem:[#allocation5 + $0x60] sm:$0xff]  ;;  %v57_v23 = vld [vmem:[#allocation5 + $0x70] sm:$0xff]  ;;  %v60_v24 = vld [vmem:[#allocation5 + $0x88] sm:$0xff]  ;;  %p436_p5 = por %p435_p4, %p434_p3 }
  0x2d   :  { %348 = vmatpush1.bf16.msra.mxu1 %v347_v13  ;;  %v319_v22 = vpack.c.bf16 %v55_v20, %v51_v19  ;;  %v64_v25 = vld [vmem:[#allocation5 + $0xa8] sm:$0xff]  ;;  %318 = vmatprep.subr.bf16.mxu0 %v317_v17  ;;  %v351_v26 = vpack.c.bf16 %v57_v23, %v53_v21  ;;  %v62_v28 = vld [vmem:[#allocation5 + $0x98] sm:$0xff]  ;;  %v59_v30 = vld [vmem:[#allocation5 + $0x80] sm:$0xff] }
  0x2e   :  { %350 = vmatprep.subr.bf16.mxu1 %v349_v18  ;;  %v321_v27 = vpack.c.bf16 %v64_v25, %v60_v24  ;;  %v66_v29 = vld [vmem:[#allocation5 + $0xb8] sm:$0xff]  ;;  %v63_v32 = vld [vmem:[#allocation5 + $0xa0] sm:$0xff]  ;;  %v61_v33 = vld [vmem:[#allocation5 + $0x90] sm:$0xff]  ;;  %p437_p6 = pnand %p436_p5, %p430_p2 }
  0x2f   :  { %v353_v31 = vpack.c.bf16 %v66_v29, %v62_v28  ;;  %v65_v34 = vld [vmem:[#allocation5 + $0xb0] sm:$0xff]  ;;  %v323_v35 = vpack.c.bf16 %v63_v32, %v59_v30  ;;  %v68_v36 = vld [vmem:[#allocation5 + $0xc8] sm:$0xff]  ;;  %v70_v38 = vld [vmem:[#allocation5 + $0xd8] sm:$0xff] }
  0x30   :  { %320 = vmatpush1.bf16.msra.mxu0 %v319_v22  ;;  %v72_v37 = vld [vmem:[#allocation5 + $0xe8] sm:$0xff]  ;;  %v355_v39 = vpack.c.bf16 %v65_v34, %v61_v33  ;;  %v74_v41 = vld [vmem:[#allocation5 + $0xf8] sm:$0xff]  ;;  %v67_v42 = vld [vmem:[#allocation5 + $0xc0] sm:$0xff] }
  0x31   :  { %352 = vmatpush1.bf16.msra.mxu1 %v351_v26  ;;  %322 = vmatprep.subr.bf16.mxu0 %v321_v27  ;;  %v325_v40 = vpack.c.bf16 %v72_v37, %v68_v36  ;;  %v71_v43 = vld [vmem:[#allocation5 + $0xe0] sm:$0xff]  ;;  %v357_v44 = vpack.c.bf16 %v74_v41, %v70_v38  ;;  %v69_v45 = vld [vmem:[#allocation5 + $0xd0] sm:$0xff]  ;;  %v76_v47 = vld [vmem:[#allocation5 + $0x108] sm:$0xff] }
  0x32   :  { %354 = vmatprep.subr.bf16.mxu1 %v353_v31  ;;  %v73_v46 = vld [vmem:[#allocation5 + $0xf0] sm:$0xff]  ;;  %v80_v48 = vld [vmem:[#allocation5 + $0x128] sm:$0xff]  ;;  %v78_v49 = vld [vmem:[#allocation5 + $0x118] sm:$0xff]  ;;  %v327_v51 = vpack.c.bf16 %v71_v43, %v67_v42 }
  0x33   :  { %v82_v50 = vld [vmem:[#allocation5 + $0x138] sm:$0xff]  ;;  %v359_v52 = vpack.c.bf16 %v73_v46, %v69_v45  ;;  %v329_v53 = vpack.c.bf16 %v80_v48, %v76_v47  ;;  %v75_v54 = vld [vmem:[#allocation5 + $0x100] sm:$0xff]  ;;  %v77_v56 = vld [vmem:[#allocation5 + $0x110] sm:$0xff] }
  0x34   :  { %324 = vmatpush1.bf16.msra.mxu0 %v323_v35  ;;  %v79_v55 = vld [vmem:[#allocation5 + $0x120] sm:$0xff]  ;;  %v361_v57 = vpack.c.bf16 %v82_v50, %v78_v49  ;;  %v81_v58 = vld [vmem:[#allocation5 + $0x130] sm:$0xff]  ;;  %v84_v59 = vld [vmem:[#allocation5 + $0x148] sm:$0xff] }
  0x35   :  { %356 = vmatpush1.bf16.msra.mxu1 %v355_v39  ;;  %326 = vmatprep.subr.bf16.mxu0 %v325_v40  ;;  %v88_v60 = vld [vmem:[#allocation5 + $0x168] sm:$0xff]  ;;  %v86_v61 = vld [vmem:[#allocation5 + $0x158] sm:$0xff]  ;;  %v331_v63 = vpack.c.bf16 %v79_v55, %v75_v54  ;;  %v363_v1 = vpack.c.bf16 %v81_v58, %v77_v56  ;;  %v83_v3 = vld [vmem:[#allocation5 + $0x140] sm:$0xff] }
  0x36   :  { %358 = vmatprep.subr.bf16.mxu1 %v357_v44  ;;  %v90_v62 = vld [vmem:[#allocation5 + $0x178] sm:$0xff]  ;;  %v333_v2 = vpack.c.bf16 %v88_v60, %v84_v59  ;;  %v87_v4 = vld [vmem:[#allocation5 + $0x160] sm:$0xff]  ;;  %v85_v5 = vld [vmem:[#allocation5 + $0x150] sm:$0xff] }
  0x37   :  { %v365_v6 = vpack.c.bf16 %v90_v62, %v86_v61  ;;  %v89_v7 = vld [vmem:[#allocation5 + $0x170] sm:$0xff]  ;;  %v92_v8 = vld [vmem:[#allocation5 + $0x188] sm:$0xff]  ;;  %v94_v10 = vld [vmem:[#allocation5 + $0x198] sm:$0xff]  ;;  %v335_v12 = vpack.c.bf16 %v87_v4, %v83_v3 }
  0x38   :  { %328 = vmatpush1.bf16.msra.mxu0 %v327_v51  ;;  %v96_v9 = vld [vmem:[#allocation5 + $0x1a8] sm:$0xff]  ;;  %v98_v11 = vld [vmem:[#allocation5 + $0x1b8] sm:$0xff]  ;;  %v367_v13 = vpack.c.bf16 %v89_v7, %v85_v5  ;;  %v91_v15 = vld [vmem:[#allocation5 + $0x180] sm:$0xff] }
  0x39   :  { %360 = vmatpush1.bf16.msra.mxu1 %v359_v52  ;;  %330 = vmatprep.subr.bf16.mxu0 %v329_v53  ;;  %v337_v14 = vpack.c.bf16 %v96_v9, %v92_v8  ;;  %v95_v16 = vld [vmem:[#allocation5 + $0x1a0] sm:$0xff]  ;;  %v93_v17 = vld [vmem:[#allocation5 + $0x190] sm:$0xff]  ;;  %v369_v18 = vpack.c.bf16 %v98_v11, %v94_v10  ;;  %v100_v20 = vld [vmem:[#allocation5 + $0x1c8] sm:$0xff] }
  0x3a   :  { %362 = vmatprep.subr.bf16.mxu1 %v361_v57  ;;  %v97_v19 = vld [vmem:[#allocation5 + $0x1b0] sm:$0xff]  ;;  %v104_v21 = vld [vmem:[#allocation5 + $0x1e8] sm:$0xff]  ;;  %v102_v22 = vld [vmem:[#allocation5 + $0x1d8] sm:$0xff]  ;;  %v339_v24 = vpack.c.bf16 %v95_v16, %v91_v15 }
  0x3b   :  { %v106_v23 = vld [vmem:[#allocation5 + $0x1f8] sm:$0xff]  ;;  %v371_v25 = vpack.c.bf16 %v97_v19, %v93_v17  ;;  %v341_v26 = vpack.c.bf16 %v104_v21, %v100_v20  ;;  %v99_v27 = vld [vmem:[#allocation5 + $0x1c0] sm:$0xff]  ;;  %v101_v30 = vld [vmem:[#allocation5 + $0x1d0] sm:$0xff] }
  0x3c   :  { %332 = vmatpush1.bf16.msra.mxu0 %v331_v63  ;;  %v103_v28 = vld [vmem:[#allocation5 + $0x1e0] sm:$0xff]  ;;  %v373_v29 = vpack.c.bf16 %v106_v23, %v102_v22  ;;  %v105_v31 = vld [vmem:[#allocation5 + $0x1f0] sm:$0xff]  ;;  %v40_v34 = vld [vmem:[#allocation2] sm:$0xff] }
  0x3d   :  { %364 = vmatpush1.bf16.msra.mxu1 %v363_v1  ;;  %334 = vmatprep.subr.bf16.mxu0 %v333_v2  ;;  %v343_v32 = vpack.c.bf16 %v103_v28, %v99_v27  ;;  %v375_v33 = vpack.c.bf16 %v105_v31, %v101_v30  ;;  %v41_v35 = vld [vmem:[#allocation2 + $0x8] sm:$0xff]  ;;  %v42_v36 = vld [vmem:[#allocation2 + $0x10] sm:$0xff] }
  0x3e   :  { %366 = vmatprep.subr.bf16.mxu1 %v365_v6 }
  0x40   :  { %336 = vmatpush1.bf16.msra.mxu0 %v335_v12 }
  0x41   :  { %368 = vmatpush1.bf16.msra.mxu1 %v367_v13  ;;  %338 = vmatprep.subr.bf16.mxu0 %v337_v14 }
  0x42   :  { %370 = vmatprep.subr.bf16.mxu1 %v369_v18 }
  0x44   :  { %340 = vmatpush1.bf16.msra.mxu0 %v339_v24 }
  0x45   :  { %372 = vmatpush1.bf16.msra.mxu1 %v371_v25  ;;  %342 = vmatprep.subr.bf16.mxu0 %v341_v26 }
  0x46   :  { %374 = vmatprep.subr.bf16.mxu1 %v373_v29 }
  0x48   :  { %344 = vmatpush1.bf16.msra.mxu0 %v343_v32 }
  0x49   :  { %376 = vmatpush1.bf16.msra.mxu1 %v375_v33 }
  0x4b   :  { %172 = vmatmul.mubr.f32.vlgmr.msra.gmra.mrb[0].mxu0 %v40_v34 }
  0x4c   :  { %255 = vmatmul.mubr.f32.vlgmr.msra.gmra.mrb[0].mxu1 %v40_v34  ;;  %177 = vmatprep.mubr.f32.mxu0 %v463_v0 }
  0x4d   :  { %260 = vmatprep.mubr.f32.mxu1 %v463_v0 }
  0x4f   :  { %178 = vmatmul.mubr.f32.gmra.mrb[2].mxu0 %v41_v35 }
  0x50   :  { %261 = vmatmul.mubr.f32.gmra.mrb[2].mxu1 %v41_v35  ;;  %183 = vmatprep.mubr.f32.mxu0 %v463_v0 }
  0x51   :  { %266 = vmatprep.mubr.f32.mxu1 %v463_v0 }
  0x53   :  { %184 = vmatmul.mubr.f32.gmra.mrb[4].mxu0 %v42_v36 }
  0x54   :  { %267 = vmatmul.mubr.f32.gmra.mrb[4].mxu1 %v42_v36 }
 0x11e   :  { %v173_v37 = vpop.f32.mrb[0].mxu0 }
 0x11f   :  { %v256_v38 = vpop.f32.mrb[0].mxu1  ;;  %v175_v39 = vpop.f32.mrb[1].mxu0  ;;  %v273_v42 = vmax.f32 %v173_v37, 0.0 }
 0x120   :  { %v258_v40 = vpop.f32.mrb[1].mxu1  ;;  %v275_v46 = vmax.f32 %v256_v38, 0.0  ;;  %v274_v47 = vmax.f32 %v175_v39, 0.0 }
 0x121   :  { %v276_v51 = vmax.f32 %v258_v40, 0.0 }
 0x122   :  { %v179_v41 = vpop.f32.mrb[2].mxu0 }
 0x123   :  { %v277_v43 = vmax.f32 %v179_v41, 0.0  ;;  %v262_v44 = vpop.f32.mrb[2].mxu1  ;;  %v181_v45 = vpop.f32.mrb[3].mxu0 }
 0x124   :  { %v279_v48 = vmax.f32 %v262_v44, 0.0  ;;  %v278_v49 = vmax.f32 %v181_v45, 0.0  ;;  %v264_v50 = vpop.f32.mrb[3].mxu1 }
 0x125   :  { %v285_v52 = vadd.f32 %v277_v43, %v273_v42  ;;  %v280_v53 = vmax.f32 %v264_v50, 0.0 }
 0x126   :  { %v287_v0 = vadd.f32 %v279_v48, %v275_v46  ;;  %v286_v54 = vadd.f32 %v278_v49, %v274_v47  ;;  %v185_v55 = vpop.f32.mrb[4].mxu0 }
 0x127   :  { %v288_v56 = vadd.f32 %v280_v53, %v276_v51  ;;  %v281_v57 = vmax.f32 %v185_v55, 0.0  ;;  %v268_v58 = vpop.f32.mrb[4].mxu1  ;;  %v187_v59 = vpop.f32.mrb[5].mxu0 }
 0x128   :  { %v283_v60 = vmax.f32 %v268_v58, 0.0  ;;  %v282_v61 = vmax.f32 %v187_v59, 0.0  ;;  %v270_v62 = vpop.f32.mrb[5].mxu1 }
 0x129   :  { %v289_v63 = vadd.f32 %v285_v52, %v281_v57  ;;  %v284_v1 = vmax.f32 %v270_v62, 0.0 }
 0x12a   :  { %v291_v2 = vadd.f32 %v287_v0, %v283_v60  ;;  %v290_v3 = vadd.f32 %v286_v54, %v282_v61 }
 0x12b   :  { %293 = vst [vmem:[#allocation7] sm:$0xff] %v289_v63  ;;  %v292_v4 = vadd.f32 %v288_v56, %v284_v1 }
 0x12c   :  { %295 = vst [vmem:[#allocation7 + $0x10] sm:$0xff] %v291_v2  ;;  %294 = vst [vmem:[#allocation7 + $0x8] sm:$0xff] %v290_v3 }
 0x12d   :  { %296 = vst [vmem:[#allocation7 + $0x18] sm:$0xff] %v292_v4 }
 0x12e   :  { %440 = shalt.err (!%p437_p6)
}
 0x12f   :  { %s441_s12 = scalar_lea.hbm %s524_s2, 512 }
 0x130   :  { %p442_p7 = scmp.ne.s32.totalorder %s524_s2, %s441_s12  ;;  %p445_p8 = scmp.lt.u32.totalorder %s441_s12, %s524_s2 }
 0x132   :  { %p447_p9 = pnand %p445_p8, %p442_p7 }
 0x134   :  { %450 = shalt.err (!%p447_p9)
}
 0x135   :  { %306 = dma.vmem_to_hbm [thread:$0]  %s304_s8, 512, %s524_s2, [#allocation4]  }
 0x136   :  { %455 = dma.done.wait [#allocation4], 512  }
 0x137   :  { %456 = vsyncadd [#allocation4], 4294966784 }
 0x138   :  { %310 = vsyncpa [#allocation3], 1 }
 0x139   :  { %311 = vsyncpa [#allocation6], 1 }
 0x13a   :  { %312 = vsyncpa [#allocation4], 1 }

</bundles_post_ra>
